<compile_context>
chip_gen: v5e
topology: v5e:2x2
jax: 0.10.0
libtpu: 0.0.40
codegen_flags: <defaults>
</compile_context>

<pallas_src>
from functools import partial

import numpy as np
import jax
import jax.numpy as jnp
from jax.experimental import pallas as pl
from jax.experimental.pallas import tpu as pltpu


# -----------------------------------------------------------------------------
# Pallas kernel: one full encoder block, whole batch resident in VMEM
# -----------------------------------------------------------------------------
def encoder_block_kernel(x_ref, bias_ref,
                         wq_ref, wk_ref, wv_ref, wo_ref,
                         w1_ref, w2_ref,
                         vecs_ref, b1_ref,
                         o_ref,
                         *, num_heads, eps):
    m, Tx, D = x_ref.shape
    dh = D // num_heads
    inv_D = 1.0 / float(D)                      # compile-time constant

    x = x_ref[...].reshape(m * Tx, D)           # (m*Tx, D) f32
    x_bf = x.astype(jnp.bfloat16)

    # packed (1, D) vectors: bq, bk, bv, bo, g1, be1, b2, g2, be2
    vecs = vecs_ref[...]                        # (9, D) f32
    bq, bk, bv, bo = vecs[0:1], vecs[1:2], vecs[2:3], vecs[3:4]
    g1, be1 = vecs[4:5], vecs[5:6]
    b2 = vecs[6:7]
    g2, be2 = vecs[7:8], vecs[8:9]
    b1 = b1_ref[...]                            # (1, F) f32

    # ---- Q/K/V projections (1/sqrt(dh) already folded into wq/bq) ----
    q = jnp.dot(x_bf, wq_ref[...], preferred_element_type=jnp.float32) + bq
    k = jnp.dot(x_bf, wk_ref[...], preferred_element_type=jnp.float32) + bk
    v = jnp.dot(x_bf, wv_ref[...], preferred_element_type=jnp.float32) + bv

    q3 = q.reshape(m, Tx, D).astype(jnp.bfloat16)
    k3 = k.reshape(m, Tx, D).astype(jnp.bfloat16)
    v3 = v.reshape(m, Tx, D).astype(jnp.bfloat16)

    bias = bias_ref[...]                        # (m, 1, Tx) additive mask, f32

    # ---- multi-head attention: heads statically unrolled, batched over m ----
    heads = []
    for h in range(num_heads):
        qh = q3[:, :, h * dh:(h + 1) * dh]      # (m, Tx, dh) bf16
        kh = k3[:, :, h * dh:(h + 1) * dh]
        vh = v3[:, :, h * dh:(h + 1) * dh]
        s = jnp.einsum('bqd,bkd->bqk', qh, kh,
                       preferred_element_type=jnp.float32)          # (m,Tx,Tx)
        s = s + bias                                                 # key-side mask
        s_max = jnp.max(s, axis=-1, keepdims=True)
        p = jnp.exp(s - s_max)
        l = jnp.sum(p, axis=-1, keepdims=True)                       # (m,Tx,1)
        oh = jnp.einsum('bqk,bkd->bqd', p.astype(jnp.bfloat16), vh,
                        preferred_element_type=jnp.float32)          # (m,Tx,dh)
        heads.append(oh * pl.reciprocal(l, approx=True))             # deferred norm
    att = jnp.concatenate(heads, axis=-1).reshape(m * Tx, D)         # (m*Tx, D) f32
    att = jnp.dot(att.astype(jnp.bfloat16), wo_ref[...],
                  preferred_element_type=jnp.float32) + bo

    # ---- residual + LayerNorm 1 (single reduction pass, rsqrt on EUP) ----
    y = x + att
    mu1 = jnp.sum(y, axis=-1, keepdims=True) * inv_D
    ms1 = jnp.sum(y * y, axis=-1, keepdims=True) * inv_D
    var1 = ms1 - mu1 * mu1
    y = (y - mu1) * jax.lax.rsqrt(var1 + eps) * g1 + be1

    # ---- FeedForward: Linear -> ReLU -> Linear ----
    h1 = jnp.dot(y.astype(jnp.bfloat16), w1_ref[...],
                 preferred_element_type=jnp.float32) + b1
    h1 = jnp.maximum(h1, 0.0)
    ff = jnp.dot(h1.astype(jnp.bfloat16), w2_ref[...],
                 preferred_element_type=jnp.float32) + b2

    # ---- residual + LayerNorm 2 ----
    z = y + ff
    mu2 = jnp.sum(z, axis=-1, keepdims=True) * inv_D
    ms2 = jnp.sum(z * z, axis=-1, keepdims=True) * inv_D
    var2 = ms2 - mu2 * mu2
    z = (z - mu2) * jax.lax.rsqrt(var2 + eps) * g2 + be2

    o_ref[...] = z.reshape(m, Tx, D)


# -----------------------------------------------------------------------------
# Wrapper: prepares bf16 weights, additive mask bias, packed vectors
# -----------------------------------------------------------------------------
def encoder_block(X_emb_pos, X_mask, p, *, num_heads, eps=1e-5):
    m, Tx, D = X_emb_pos.shape
    dh = D // num_heads
    scale = 1.0 / np.sqrt(float(dh))

    # PyTorch-style mask (m,1,1,Tx) with 1=keep / 0=suppress -> additive bias
    bias = jnp.where(X_mask.reshape(m, 1, Tx) == 0,
                     jnp.float32(-1e9), jnp.float32(0.0))

    # fold the score scale into the Q projection; bf16 weights for the MXU
    wq = (p["wq"] * scale).astype(jnp.bfloat16)
    wk = p["wk"].astype(jnp.bfloat16)
    wv = p["wv"].astype(jnp.bfloat16)
    wo = p["wo"].astype(jnp.bfloat16)
    w1 = p["w1"].astype(jnp.bfloat16)
    w2 = p["w2"].astype(jnp.bfloat16)

    # pack all (1, D) bias / gamma / beta vectors into one (9, D) f32 array
    vecs = jnp.concatenate(
        [p["bq"] * scale, p["bk"], p["bv"], p["bo"],
         p["g1"], p["be1"], p["b2"], p["g2"], p["be2"]], axis=0)
    b1 = p["b1"]                                    # (1, F) f32

    vmem = pl.BlockSpec(memory_space=pltpu.MemorySpace.VMEM)
    kernel = partial(encoder_block_kernel, num_heads=num_heads, eps=eps)
    return pl.pallas_call(
        kernel,
        in_specs=[vmem] * 10,
        out_specs=vmem,
        out_shape=jax.ShapeDtypeStruct((m, Tx, D), jnp.float32),
    )(X_emb_pos, bias, wq, wk, wv, wo, w1, w2, vecs, b1)


# -----------------------------------------------------------------------------
if __name__ == "__main__":
    # Small, module-consistent shapes
    m, Tx = 2, 8
    D = 32                 # embed_dim
    num_heads = 4
    F = 64                 # forward_expansion_dim (small for the smoke test)

    key = jax.random.PRNGKey(0)
    ks = jax.random.split(key, 12)

    def w(k, shape, s=0.02):
        return s * jax.random.normal(k, shape, jnp.float32)

    params = dict(
        wq=w(ks[0], (D, D)), bq=w(ks[6], (1, D), 0.01),
        wk=w(ks[1], (D, D)), bk=w(ks[7], (1, D), 0.01),
        wv=w(ks[2], (D, D)), bv=w(ks[8], (1, D), 0.01),
        wo=w(ks[3], (D, D)), bo=w(ks[9], (1, D), 0.01),
        g1=jnp.ones((1, D), jnp.float32), be1=jnp.zeros((1, D), jnp.float32),
        w1=w(ks[4], (D, F)), b1=w(ks[10], (1, F), 0.01),
        w2=w(ks[5], (F, D)), b2=jnp.zeros((1, D), jnp.float32),
        g2=jnp.ones((1, D), jnp.float32), be2=jnp.zeros((1, D), jnp.float32),
    )

    # X_emb_pos: already embedded + positionally encoded input (per module spec)
    X_emb_pos = jax.random.normal(ks[11], (m, Tx, D), jnp.float32)

    # mask: keep everything in example 0, suppress last 3 key positions in example 1
    mask_np = np.ones((m, 1, 1, Tx), dtype=np.int32)
    mask_np[1, 0, 0, Tx - 3:] = 0
    X_mask = jnp.asarray(mask_np)

    X_enc = encoder_block(X_emb_pos, X_mask, params, num_heads=num_heads, eps=1e-5)
    X_enc = jax.block_until_ready(X_enc)

    assert X_enc.shape == (m, Tx, D)
    assert bool(jnp.all(jnp.isfinite(X_enc)))
    print("KERNEL_OK")
</pallas_src>

<mosaic_0001>
module attributes {stable_mosaic.version = 11 : i64} {
  func.func @encoder_block_kernel(%arg0: memref<2x8x32xf32, #tpu.memory_space<vmem>>, %arg1: memref<2x1x8xf32, #tpu.memory_space<vmem>>, %arg2: memref<32x32xbf16, #tpu.memory_space<vmem>>, %arg3: memref<32x32xbf16, #tpu.memory_space<vmem>>, %arg4: memref<32x32xbf16, #tpu.memory_space<vmem>>, %arg5: memref<32x32xbf16, #tpu.memory_space<vmem>>, %arg6: memref<32x64xbf16, #tpu.memory_space<vmem>>, %arg7: memref<64x32xbf16, #tpu.memory_space<vmem>>, %arg8: memref<9x32xf32, #tpu.memory_space<vmem>>, %arg9: memref<1x64xf32, #tpu.memory_space<vmem>>, %arg10: memref<2x8x32xf32, #tpu.memory_space<vmem>>) attributes {dimension_semantics = [], scalar_prefetch = 0 : i64, scratch_operands = 0 : i64, tpu.core_type = #tpu.core_type<tc>} {
    %c0 = arith.constant 0 : index
    %c0_0 = arith.constant 0 : index
    %c0_1 = arith.constant 0 : index
    %0 = vector.load %arg0[%c0, %c0_0, %c0_1] : memref<2x8x32xf32, #tpu.memory_space<vmem>>, vector<2x8x32xf32>
    %1 = vector.shape_cast %0 : vector<2x8x32xf32> to vector<16x32xf32>
    %2 = arith.truncf %1 : vector<16x32xf32> to vector<16x32xbf16>
    %c0_2 = arith.constant 0 : index
    %c0_3 = arith.constant 0 : index
    %3 = vector.load %arg8[%c0_2, %c0_3] : memref<9x32xf32, #tpu.memory_space<vmem>>, vector<9x32xf32>
    %4 = vector.extract_strided_slice %3 {offsets = [0, 0], sizes = [1, 32], strides = [1, 1]} : vector<9x32xf32> to vector<1x32xf32>
    %5 = vector.extract_strided_slice %3 {offsets = [1, 0], sizes = [1, 32], strides = [1, 1]} : vector<9x32xf32> to vector<1x32xf32>
    %6 = vector.extract_strided_slice %3 {offsets = [2, 0], sizes = [1, 32], strides = [1, 1]} : vector<9x32xf32> to vector<1x32xf32>
    %7 = vector.extract_strided_slice %3 {offsets = [3, 0], sizes = [1, 32], strides = [1, 1]} : vector<9x32xf32> to vector<1x32xf32>
    %8 = vector.extract_strided_slice %3 {offsets = [4, 0], sizes = [1, 32], strides = [1, 1]} : vector<9x32xf32> to vector<1x32xf32>
    %9 = vector.extract_strided_slice %3 {offsets = [5, 0], sizes = [1, 32], strides = [1, 1]} : vector<9x32xf32> to vector<1x32xf32>
    %10 = vector.extract_strided_slice %3 {offsets = [6, 0], sizes = [1, 32], strides = [1, 1]} : vector<9x32xf32> to vector<1x32xf32>
    %11 = vector.extract_strided_slice %3 {offsets = [7, 0], sizes = [1, 32], strides = [1, 1]} : vector<9x32xf32> to vector<1x32xf32>
    %12 = vector.extract_strided_slice %3 {offsets = [8, 0], sizes = [1, 32], strides = [1, 1]} : vector<9x32xf32> to vector<1x32xf32>
    %c0_4 = arith.constant 0 : index
    %c0_5 = arith.constant 0 : index
    %13 = vector.load %arg9[%c0_4, %c0_5] : memref<1x64xf32, #tpu.memory_space<vmem>>, vector<1x64xf32>
    %c0_6 = arith.constant 0 : index
    %c0_7 = arith.constant 0 : index
    %14 = vector.load %arg2[%c0_6, %c0_7] : memref<32x32xbf16, #tpu.memory_space<vmem>>, vector<32x32xbf16>
    %cst = arith.constant dense<0.000000e+00> : vector<16x32xf32>
    %15 = tpu.matmul %2, %14, %cst {dimension_numbers = #tpu.dot_dimension_numbers<[1], [0], [0], [1], [0, 0, 1, 1], [], []>} : vector<16x32xbf16>, vector<32x32xbf16>, vector<16x32xf32> -> vector<16x32xf32>
    %16 = vector.broadcast %4 : vector<1x32xf32> to vector<16x32xf32>
    %17 = arith.addf %15, %16 : vector<16x32xf32>
    %c0_8 = arith.constant 0 : index
    %c0_9 = arith.constant 0 : index
    %18 = vector.load %arg3[%c0_8, %c0_9] : memref<32x32xbf16, #tpu.memory_space<vmem>>, vector<32x32xbf16>
    %cst_10 = arith.constant dense<0.000000e+00> : vector<16x32xf32>
    %19 = tpu.matmul %2, %18, %cst_10 {dimension_numbers = #tpu.dot_dimension_numbers<[1], [0], [0], [1], [0, 0, 1, 1], [], []>} : vector<16x32xbf16>, vector<32x32xbf16>, vector<16x32xf32> -> vector<16x32xf32>
    %20 = vector.broadcast %5 : vector<1x32xf32> to vector<16x32xf32>
    %21 = arith.addf %19, %20 : vector<16x32xf32>
    %c0_11 = arith.constant 0 : index
    %c0_12 = arith.constant 0 : index
    %22 = vector.load %arg4[%c0_11, %c0_12] : memref<32x32xbf16, #tpu.memory_space<vmem>>, vector<32x32xbf16>
    %cst_13 = arith.constant dense<0.000000e+00> : vector<16x32xf32>
    %23 = tpu.matmul %2, %22, %cst_13 {dimension_numbers = #tpu.dot_dimension_numbers<[1], [0], [0], [1], [0, 0, 1, 1], [], []>} : vector<16x32xbf16>, vector<32x32xbf16>, vector<16x32xf32> -> vector<16x32xf32>
    %24 = vector.broadcast %6 : vector<1x32xf32> to vector<16x32xf32>
    %25 = arith.addf %23, %24 : vector<16x32xf32>
    %26 = vector.shape_cast %17 : vector<16x32xf32> to vector<2x8x32xf32>
    %27 = arith.truncf %26 : vector<2x8x32xf32> to vector<2x8x32xbf16>
    %28 = vector.shape_cast %21 : vector<16x32xf32> to vector<2x8x32xf32>
    %29 = arith.truncf %28 : vector<2x8x32xf32> to vector<2x8x32xbf16>
    %30 = vector.shape_cast %25 : vector<16x32xf32> to vector<2x8x32xf32>
    %31 = arith.truncf %30 : vector<2x8x32xf32> to vector<2x8x32xbf16>
    %c0_14 = arith.constant 0 : index
    %c0_15 = arith.constant 0 : index
    %c0_16 = arith.constant 0 : index
    %32 = vector.load %arg1[%c0_14, %c0_15, %c0_16] : memref<2x1x8xf32, #tpu.memory_space<vmem>>, vector<2x1x8xf32>
    %33 = vector.extract_strided_slice %27 {offsets = [0, 0, 0], sizes = [2, 8, 8], strides = [1, 1, 1]} : vector<2x8x32xbf16> to vector<2x8x8xbf16>
    %34 = vector.extract_strided_slice %29 {offsets = [0, 0, 0], sizes = [2, 8, 8], strides = [1, 1, 1]} : vector<2x8x32xbf16> to vector<2x8x8xbf16>
    %35 = vector.extract_strided_slice %31 {offsets = [0, 0, 0], sizes = [2, 8, 8], strides = [1, 1, 1]} : vector<2x8x32xbf16> to vector<2x8x8xbf16>
    "tpu.trace_start"() <{level = 10 : i32, message = "bqd,bkd->bqk"}> : () -> ()
    %cst_17 = arith.constant dense<0.000000e+00> : vector<2x8x8xf32>
    %36 = tpu.matmul %33, %34, %cst_17 {dimension_numbers = #tpu.dot_dimension_numbers<[2], [2], [1], [1], [0, 0, 0, 1, 1, 1], [0], [0]>} : vector<2x8x8xbf16>, vector<2x8x8xbf16>, vector<2x8x8xf32> -> vector<2x8x8xf32>
    "tpu.trace_stop"() : () -> ()
    %37 = vector.broadcast %32 : vector<2x1x8xf32> to vector<2x8x8xf32>
    %38 = arith.addf %36, %37 : vector<2x8x8xf32>
    %cst_18 = arith.constant dense<0xFF800000> : vector<2x8xf32>
    %39 = vector.multi_reduction <maximumf>, %38, %cst_18 [2] : vector<2x8x8xf32> to vector<2x8xf32>
    %40 = vector.shape_cast %39 : vector<2x8xf32> to vector<2x8x1xf32>
    %41 = vector.broadcast %40 : vector<2x8x1xf32> to vector<2x8x8xf32>
    %42 = arith.subf %38, %41 : vector<2x8x8xf32>
    %43 = math.exp %42 : vector<2x8x8xf32>
    %cst_19 = arith.constant dense<0.000000e+00> : vector<2x8xf32>
    %44 = vector.multi_reduction <add>, %43, %cst_19 [2] : vector<2x8x8xf32> to vector<2x8xf32>
    %45 = vector.shape_cast %44 : vector<2x8xf32> to vector<2x8x1xf32>
    %46 = arith.truncf %43 : vector<2x8x8xf32> to vector<2x8x8xbf16>
    "tpu.trace_start"() <{level = 10 : i32, message = "bqk,bkd->bqd"}> : () -> ()
    %cst_20 = arith.constant dense<0.000000e+00> : vector<2x8x8xf32>
    %47 = tpu.matmul %46, %35, %cst_20 {dimension_numbers = #tpu.dot_dimension_numbers<[2], [1], [1], [2], [0, 0, 0, 1, 1, 2], [0], [0]>} : vector<2x8x8xbf16>, vector<2x8x8xbf16>, vector<2x8x8xf32> -> vector<2x8x8xf32>
    "tpu.trace_stop"() : () -> ()
    %48 = tpu.reciprocal %45 {approx = true} : vector<2x8x1xf32> -> vector<2x8x1xf32>
    %49 = vector.broadcast %48 : vector<2x8x1xf32> to vector<2x8x8xf32>
    %50 = arith.mulf %47, %49 : vector<2x8x8xf32>
    %51 = vector.extract_strided_slice %27 {offsets = [0, 0, 8], sizes = [2, 8, 8], strides = [1, 1, 1]} : vector<2x8x32xbf16> to vector<2x8x8xbf16>
    %52 = vector.extract_strided_slice %29 {offsets = [0, 0, 8], sizes = [2, 8, 8], strides = [1, 1, 1]} : vector<2x8x32xbf16> to vector<2x8x8xbf16>
    %53 = vector.extract_strided_slice %31 {offsets = [0, 0, 8], sizes = [2, 8, 8], strides = [1, 1, 1]} : vector<2x8x32xbf16> to vector<2x8x8xbf16>
    "tpu.trace_start"() <{level = 10 : i32, message = "bqd,bkd->bqk"}> : () -> ()
    %cst_21 = arith.constant dense<0.000000e+00> : vector<2x8x8xf32>
    %54 = tpu.matmul %51, %52, %cst_21 {dimension_numbers = #tpu.dot_dimension_numbers<[2], [2], [1], [1], [0, 0, 0, 1, 1, 1], [0], [0]>} : vector<2x8x8xbf16>, vector<2x8x8xbf16>, vector<2x8x8xf32> -> vector<2x8x8xf32>
    "tpu.trace_stop"() : () -> ()
    %55 = vector.broadcast %32 : vector<2x1x8xf32> to vector<2x8x8xf32>
    %56 = arith.addf %54, %55 : vector<2x8x8xf32>
    %cst_22 = arith.constant dense<0xFF800000> : vector<2x8xf32>
    %57 = vector.multi_reduction <maximumf>, %56, %cst_22 [2] : vector<2x8x8xf32> to vector<2x8xf32>
    %58 = vector.shape_cast %57 : vector<2x8xf32> to vector<2x8x1xf32>
    %59 = vector.broadcast %58 : vector<2x8x1xf32> to vector<2x8x8xf32>
    %60 = arith.subf %56, %59 : vector<2x8x8xf32>
    %61 = math.exp %60 : vector<2x8x8xf32>
    %cst_23 = arith.constant dense<0.000000e+00> : vector<2x8xf32>
    %62 = vector.multi_reduction <add>, %61, %cst_23 [2] : vector<2x8x8xf32> to vector<2x8xf32>
    %63 = vector.shape_cast %62 : vector<2x8xf32> to vector<2x8x1xf32>
    %64 = arith.truncf %61 : vector<2x8x8xf32> to vector<2x8x8xbf16>
    "tpu.trace_start"() <{level = 10 : i32, message = "bqk,bkd->bqd"}> : () -> ()
    %cst_24 = arith.constant dense<0.000000e+00> : vector<2x8x8xf32>
    %65 = tpu.matmul %64, %53, %cst_24 {dimension_numbers = #tpu.dot_dimension_numbers<[2], [1], [1], [2], [0, 0, 0, 1, 1, 2], [0], [0]>} : vector<2x8x8xbf16>, vector<2x8x8xbf16>, vector<2x8x8xf32> -> vector<2x8x8xf32>
    "tpu.trace_stop"() : () -> ()
    %66 = tpu.reciprocal %63 {approx = true} : vector<2x8x1xf32> -> vector<2x8x1xf32>
    %67 = vector.broadcast %66 : vector<2x8x1xf32> to vector<2x8x8xf32>
    %68 = arith.mulf %65, %67 : vector<2x8x8xf32>
    %69 = vector.extract_strided_slice %27 {offsets = [0, 0, 16], sizes = [2, 8, 8], strides = [1, 1, 1]} : vector<2x8x32xbf16> to vector<2x8x8xbf16>
    %70 = vector.extract_strided_slice %29 {offsets = [0, 0, 16], sizes = [2, 8, 8], strides = [1, 1, 1]} : vector<2x8x32xbf16> to vector<2x8x8xbf16>
    %71 = vector.extract_strided_slice %31 {offsets = [0, 0, 16], sizes = [2, 8, 8], strides = [1, 1, 1]} : vector<2x8x32xbf16> to vector<2x8x8xbf16>
    "tpu.trace_start"() <{level = 10 : i32, message = "bqd,bkd->bqk"}> : () -> ()
    %cst_25 = arith.constant dense<0.000000e+00> : vector<2x8x8xf32>
    %72 = tpu.matmul %69, %70, %cst_25 {dimension_numbers = #tpu.dot_dimension_numbers<[2], [2], [1], [1], [0, 0, 0, 1, 1, 1], [0], [0]>} : vector<2x8x8xbf16>, vector<2x8x8xbf16>, vector<2x8x8xf32> -> vector<2x8x8xf32>
    "tpu.trace_stop"() : () -> ()
    %73 = vector.broadcast %32 : vector<2x1x8xf32> to vector<2x8x8xf32>
    %74 = arith.addf %72, %73 : vector<2x8x8xf32>
    %cst_26 = arith.constant dense<0xFF800000> : vector<2x8xf32>
    %75 = vector.multi_reduction <maximumf>, %74, %cst_26 [2] : vector<2x8x8xf32> to vector<2x8xf32>
    %76 = vector.shape_cast %75 : vector<2x8xf32> to vector<2x8x1xf32>
    %77 = vector.broadcast %76 : vector<2x8x1xf32> to vector<2x8x8xf32>
    %78 = arith.subf %74, %77 : vector<2x8x8xf32>
    %79 = math.exp %78 : vector<2x8x8xf32>
    %cst_27 = arith.constant dense<0.000000e+00> : vector<2x8xf32>
    %80 = vector.multi_reduction <add>, %79, %cst_27 [2] : vector<2x8x8xf32> to vector<2x8xf32>
    %81 = vector.shape_cast %80 : vector<2x8xf32> to vector<2x8x1xf32>
    %82 = arith.truncf %79 : vector<2x8x8xf32> to vector<2x8x8xbf16>
    "tpu.trace_start"() <{level = 10 : i32, message = "bqk,bkd->bqd"}> : () -> ()
    %cst_28 = arith.constant dense<0.000000e+00> : vector<2x8x8xf32>
    %83 = tpu.matmul %82, %71, %cst_28 {dimension_numbers = #tpu.dot_dimension_numbers<[2], [1], [1], [2], [0, 0, 0, 1, 1, 2], [0], [0]>} : vector<2x8x8xbf16>, vector<2x8x8xbf16>, vector<2x8x8xf32> -> vector<2x8x8xf32>
    "tpu.trace_stop"() : () -> ()
    %84 = tpu.reciprocal %81 {approx = true} : vector<2x8x1xf32> -> vector<2x8x1xf32>
    %85 = vector.broadcast %84 : vector<2x8x1xf32> to vector<2x8x8xf32>
    %86 = arith.mulf %83, %85 : vector<2x8x8xf32>
    %87 = vector.extract_strided_slice %27 {offsets = [0, 0, 24], sizes = [2, 8, 8], strides = [1, 1, 1]} : vector<2x8x32xbf16> to vector<2x8x8xbf16>
    %88 = vector.extract_strided_slice %29 {offsets = [0, 0, 24], sizes = [2, 8, 8], strides = [1, 1, 1]} : vector<2x8x32xbf16> to vector<2x8x8xbf16>
    %89 = vector.extract_strided_slice %31 {offsets = [0, 0, 24], sizes = [2, 8, 8], strides = [1, 1, 1]} : vector<2x8x32xbf16> to vector<2x8x8xbf16>
    "tpu.trace_start"() <{level = 10 : i32, message = "bqd,bkd->bqk"}> : () -> ()
    %cst_29 = arith.constant dense<0.000000e+00> : vector<2x8x8xf32>
    %90 = tpu.matmul %87, %88, %cst_29 {dimension_numbers = #tpu.dot_dimension_numbers<[2], [2], [1], [1], [0, 0, 0, 1, 1, 1], [0], [0]>} : vector<2x8x8xbf16>, vector<2x8x8xbf16>, vector<2x8x8xf32> -> vector<2x8x8xf32>
    "tpu.trace_stop"() : () -> ()
    %91 = vector.broadcast %32 : vector<2x1x8xf32> to vector<2x8x8xf32>
    %92 = arith.addf %90, %91 : vector<2x8x8xf32>
    %cst_30 = arith.constant dense<0xFF800000> : vector<2x8xf32>
    %93 = vector.multi_reduction <maximumf>, %92, %cst_30 [2] : vector<2x8x8xf32> to vector<2x8xf32>
    %94 = vector.shape_cast %93 : vector<2x8xf32> to vector<2x8x1xf32>
    %95 = vector.broadcast %94 : vector<2x8x1xf32> to vector<2x8x8xf32>
    %96 = arith.subf %92, %95 : vector<2x8x8xf32>
    %97 = math.exp %96 : vector<2x8x8xf32>
    %cst_31 = arith.constant dense<0.000000e+00> : vector<2x8xf32>
    %98 = vector.multi_reduction <add>, %97, %cst_31 [2] : vector<2x8x8xf32> to vector<2x8xf32>
    %99 = vector.shape_cast %98 : vector<2x8xf32> to vector<2x8x1xf32>
    %100 = arith.truncf %97 : vector<2x8x8xf32> to vector<2x8x8xbf16>
    "tpu.trace_start"() <{level = 10 : i32, message = "bqk,bkd->bqd"}> : () -> ()
    %cst_32 = arith.constant dense<0.000000e+00> : vector<2x8x8xf32>
    %101 = tpu.matmul %100, %89, %cst_32 {dimension_numbers = #tpu.dot_dimension_numbers<[2], [1], [1], [2], [0, 0, 0, 1, 1, 2], [0], [0]>} : vector<2x8x8xbf16>, vector<2x8x8xbf16>, vector<2x8x8xf32> -> vector<2x8x8xf32>
    "tpu.trace_stop"() : () -> ()
    %102 = tpu.reciprocal %99 {approx = true} : vector<2x8x1xf32> -> vector<2x8x1xf32>
    %103 = vector.broadcast %102 : vector<2x8x1xf32> to vector<2x8x8xf32>
    %104 = arith.mulf %101, %103 : vector<2x8x8xf32>
    %105 = tpu.concatenate %50, %68, %86, %104 in 2 : vector<2x8x8xf32>, vector<2x8x8xf32>, vector<2x8x8xf32>, vector<2x8x8xf32> -> vector<2x8x32xf32>
    %106 = vector.shape_cast %105 : vector<2x8x32xf32> to vector<16x32xf32>
    %107 = arith.truncf %106 : vector<16x32xf32> to vector<16x32xbf16>
    %c0_33 = arith.constant 0 : index
    %c0_34 = arith.constant 0 : index
    %108 = vector.load %arg5[%c0_33, %c0_34] : memref<32x32xbf16, #tpu.memory_space<vmem>>, vector<32x32xbf16>
    %cst_35 = arith.constant dense<0.000000e+00> : vector<16x32xf32>
    %109 = tpu.matmul %107, %108, %cst_35 {dimension_numbers = #tpu.dot_dimension_numbers<[1], [0], [0], [1], [0, 0, 1, 1], [], []>} : vector<16x32xbf16>, vector<32x32xbf16>, vector<16x32xf32> -> vector<16x32xf32>
    %110 = vector.broadcast %7 : vector<1x32xf32> to vector<16x32xf32>
    %111 = arith.addf %109, %110 : vector<16x32xf32>
    %112 = arith.addf %1, %111 : vector<16x32xf32>
    %cst_36 = arith.constant dense<0.000000e+00> : vector<16xf32>
    %113 = vector.multi_reduction <add>, %112, %cst_36 [1] : vector<16x32xf32> to vector<16xf32>
    %114 = vector.shape_cast %113 : vector<16xf32> to vector<16x1xf32>
    %cst_37 = arith.constant 3.125000e-02 : f32
    %115 = vector.broadcast %cst_37 : f32 to vector<16x1xf32>
    %116 = arith.mulf %114, %115 : vector<16x1xf32>
    %117 = arith.mulf %112, %112 : vector<16x32xf32>
    %cst_38 = arith.constant dense<0.000000e+00> : vector<16xf32>
    %118 = vector.multi_reduction <add>, %117, %cst_38 [1] : vector<16x32xf32> to vector<16xf32>
    %119 = vector.shape_cast %118 : vector<16xf32> to vector<16x1xf32>
    %cst_39 = arith.constant 3.125000e-02 : f32
    %120 = vector.broadcast %cst_39 : f32 to vector<16x1xf32>
    %121 = arith.mulf %119, %120 : vector<16x1xf32>
    %122 = arith.mulf %116, %116 : vector<16x1xf32>
    %123 = arith.subf %121, %122 : vector<16x1xf32>
    %124 = vector.broadcast %116 : vector<16x1xf32> to vector<16x32xf32>
    %125 = arith.subf %112, %124 : vector<16x32xf32>
    %cst_40 = arith.constant 9.99999974E-6 : f32
    %126 = vector.broadcast %cst_40 : f32 to vector<16x1xf32>
    %127 = arith.addf %123, %126 : vector<16x1xf32>
    %128 = math.rsqrt %127 : vector<16x1xf32>
    %129 = vector.broadcast %128 : vector<16x1xf32> to vector<16x32xf32>
    %130 = arith.mulf %125, %129 : vector<16x32xf32>
    %131 = vector.broadcast %8 : vector<1x32xf32> to vector<16x32xf32>
    %132 = arith.mulf %130, %131 : vector<16x32xf32>
    %133 = vector.broadcast %9 : vector<1x32xf32> to vector<16x32xf32>
    %134 = arith.addf %132, %133 : vector<16x32xf32>
    %135 = arith.truncf %134 : vector<16x32xf32> to vector<16x32xbf16>
    %c0_41 = arith.constant 0 : index
    %c0_42 = arith.constant 0 : index
    %136 = vector.load %arg6[%c0_41, %c0_42] : memref<32x64xbf16, #tpu.memory_space<vmem>>, vector<32x64xbf16>
    %cst_43 = arith.constant dense<0.000000e+00> : vector<16x64xf32>
    %137 = tpu.matmul %135, %136, %cst_43 {dimension_numbers = #tpu.dot_dimension_numbers<[1], [0], [0], [1], [0, 0, 1, 1], [], []>} : vector<16x32xbf16>, vector<32x64xbf16>, vector<16x64xf32> -> vector<16x64xf32>
    %138 = vector.broadcast %13 : vector<1x64xf32> to vector<16x64xf32>
    %139 = arith.addf %137, %138 : vector<16x64xf32>
    %cst_44 = arith.constant 0.000000e+00 : f32
    %140 = vector.broadcast %cst_44 : f32 to vector<16x64xf32>
    %141 = arith.maximumf %139, %140 : vector<16x64xf32>
    %142 = arith.truncf %141 : vector<16x64xf32> to vector<16x64xbf16>
    %c0_45 = arith.constant 0 : index
    %c0_46 = arith.constant 0 : index
    %143 = vector.load %arg7[%c0_45, %c0_46] : memref<64x32xbf16, #tpu.memory_space<vmem>>, vector<64x32xbf16>
    %cst_47 = arith.constant dense<0.000000e+00> : vector<16x32xf32>
    %144 = tpu.matmul %142, %143, %cst_47 {dimension_numbers = #tpu.dot_dimension_numbers<[1], [0], [0], [1], [0, 0, 1, 1], [], []>} : vector<16x64xbf16>, vector<64x32xbf16>, vector<16x32xf32> -> vector<16x32xf32>
    %145 = vector.broadcast %10 : vector<1x32xf32> to vector<16x32xf32>
    %146 = arith.addf %144, %145 : vector<16x32xf32>
    %147 = arith.addf %134, %146 : vector<16x32xf32>
    %cst_48 = arith.constant dense<0.000000e+00> : vector<16xf32>
    %148 = vector.multi_reduction <add>, %147, %cst_48 [1] : vector<16x32xf32> to vector<16xf32>
    %149 = vector.shape_cast %148 : vector<16xf32> to vector<16x1xf32>
    %cst_49 = arith.constant 3.125000e-02 : f32
    %150 = vector.broadcast %cst_49 : f32 to vector<16x1xf32>
    %151 = arith.mulf %149, %150 : vector<16x1xf32>
    %152 = arith.mulf %147, %147 : vector<16x32xf32>
    %cst_50 = arith.constant dense<0.000000e+00> : vector<16xf32>
    %153 = vector.multi_reduction <add>, %152, %cst_50 [1] : vector<16x32xf32> to vector<16xf32>
    %154 = vector.shape_cast %153 : vector<16xf32> to vector<16x1xf32>
    %cst_51 = arith.constant 3.125000e-02 : f32
    %155 = vector.broadcast %cst_51 : f32 to vector<16x1xf32>
    %156 = arith.mulf %154, %155 : vector<16x1xf32>
    %157 = arith.mulf %151, %151 : vector<16x1xf32>
    %158 = arith.subf %156, %157 : vector<16x1xf32>
    %159 = vector.broadcast %151 : vector<16x1xf32> to vector<16x32xf32>
    %160 = arith.subf %147, %159 : vector<16x32xf32>
    %cst_52 = arith.constant 9.99999974E-6 : f32
    %161 = vector.broadcast %cst_52 : f32 to vector<16x1xf32>
    %162 = arith.addf %158, %161 : vector<16x1xf32>
    %163 = math.rsqrt %162 : vector<16x1xf32>
    %164 = vector.broadcast %163 : vector<16x1xf32> to vector<16x32xf32>
    %165 = arith.mulf %160, %164 : vector<16x32xf32>
    %166 = vector.broadcast %11 : vector<1x32xf32> to vector<16x32xf32>
    %167 = arith.mulf %165, %166 : vector<16x32xf32>
    %168 = vector.broadcast %12 : vector<1x32xf32> to vector<16x32xf32>
    %169 = arith.addf %167, %168 : vector<16x32xf32>
    %170 = vector.shape_cast %169 : vector<16x32xf32> to vector<2x8x32xf32>
    %c0_53 = arith.constant 0 : index
    %c0_54 = arith.constant 0 : index
    %c0_55 = arith.constant 0 : index
    %171 = vector.load %arg10[%c0_53, %c0_54, %c0_55] : memref<2x8x32xf32, #tpu.memory_space<vmem>>, vector<2x8x32xf32>
    tpu.vector_store %arg10[%c0_53, %c0_54, %c0_55], %170 {strides = array<i32>} : memref<2x8x32xf32, #tpu.memory_space<vmem>>, vector<2x8x32xf32>,
    return
  }
}

</mosaic_0001>

<bundles_post_ra>
// kernel: tpu_custom_call.1
= control target key start
LH: loop header
LB: loop body
LE: loop exit
PB: predicated region body
PF: predicated region fallthrough
CT: control target
= control target key end

     0   :  { %15 = vsyncpa [#allocation3], 0  ;;  %s1571_s0 = inlined_call_operand.vmem [shape: f32[2,8,32], index: 0, kind: input, shape index: {}]   ;;  %s1572_s1 = inlined_call_operand.hbm [shape: f32[2,1,8], index: 1, kind: input, shape index: {}]   ;;  %s1573_s2 = inlined_call_operand.vmem [shape: bf16[32,32], index: 2, kind: input, shape index: {}]   ;;  %s1574_s3 = inlined_call_operand.vmem [shape: bf16[32,32], index: 3, kind: input, shape index: {}]   ;;  %s1575_s4 = inlined_call_operand.hbm [shape: bf16[32,32], index: 4, kind: input, shape index: {}]   ;;  %s1576_s5 = inlined_call_operand.hbm [shape: bf16[32,32], index: 5, kind: input, shape index: {}]   ;;  %s1577_s6 = inlined_call_operand.hbm [shape: bf16[32,64], index: 6, kind: input, shape index: {}]   ;;  %s1578_s7 = inlined_call_operand.vmem [shape: bf16[64,32], index: 7, kind: input, shape index: {}]   ;;  %s1579_s8 = inlined_call_operand.hbm [shape: f32[9,32], index: 8, kind: input, shape index: {}]   ;;  %s1580_s9 = inlined_call_operand.vmem [shape: f32[1,64], index: 9, kind: input, shape index: {}]   ;;  %s1581_s10 = inlined_call_operand.hbm [shape: f32[2,8,32], index: 10, kind: output, shape index: {}]  }
   0x1   :  { %16 = vsyncpa [#allocation6], 0 }
   0x2   :  { %17 = vsyncpa [#allocation9], 0  ;;  %s42_s15 = sshll.u32 %s1575_s4, 4  ;;  %s43_s15 = int_to_ptr.hbm [resolvable:$true] %s42_s15 }
   0x3   :  { %18 = vsyncpa [#allocation4], 0  ;;  %s1300_s16 = smov [#allocation5]   ;;  %s68_s20 = sshll.u32 %s1577_s6, 4  ;;  %s69_s20 = int_to_ptr.hbm [resolvable:$true] %s68_s20 }
   0x4   :  { %s44_s17 = sshll.u32 %s1300_s16, 4  ;;  %s1301_s21 = smov 64   ;;  %s45_s17 = int_to_ptr.vmem [resolvable:$true] %s44_s17 }
   0x5   :  { %s1302_s22 = smov 4   ;;  %s1303_s23 = smov [#allocation8]  }
   0x6   :  { %50 = dma.hbm_to_vmem [thread:$0]  %s43_s15, 256, %s45_s17, [#allocation6], %s1301_s21, %s1301_s21, %s1302_s22  }
   0x7   :  { %s70_s24 = sshll.u32 %s1303_s23, 4  ;;  %s25_s27 = sshll.u32 %s1572_s1, 4  ;;  %s71_s24 = int_to_ptr.vmem [resolvable:$true] %s70_s24  ;;  %s26_s27 = int_to_ptr.hbm [resolvable:$true] %s25_s27 }
   0x8   :  { %76 = dma.hbm_to_vmem [thread:$0]  %s69_s20, 256, %s71_s24, [#allocation9], %s1301_s21, %s1301_s21, %s1302_s22  }
   0x9   :  { %s1304_s4 = smov [#allocation2]   ;;  %s55_s6 = sshll.u32 %s1576_s5, 4  ;;  %s56_s6 = int_to_ptr.hbm [resolvable:$true] %s55_s6 }
   0xa   :  { %s27_s28 = sshll.u32 %s1304_s4, 4  ;;  %s1305_s11 = smov 16   ;;  %s28_s28 = int_to_ptr.vmem [resolvable:$true] %s27_s28 }
   0xb   :  { %s1306_s12 = smov 1   ;;  %s1307_s13 = smov [#allocation7]  }
   0xc   :  { %33 = dma.hbm_to_vmem [thread:$0]  %s26_s27, 32, %s28_s28, [#allocation3], %s1305_s11, %s1305_s11, %s1306_s12  }
   0xd   :  { %s57_s14 = sshll.u32 %s1307_s13, 4  ;;  %s83_s16 = sshll.u32 %s1579_s8, 4  ;;  %s58_s14 = int_to_ptr.vmem [resolvable:$true] %s57_s14  ;;  %s84_s16 = int_to_ptr.hbm [resolvable:$true] %s83_s16 }
   0xe   :  { %63 = dma.hbm_to_vmem [thread:$0]  %s56_s6, 256, %s58_s14, [#allocation6], %s1301_s21, %s1301_s21, %s1302_s22  }
   0xf   :  { %s1308_s17 = smov [#allocation10]   ;;  %s1309_s19 = smov 128  }
  0x10   :  { %s85_s18 = sshll.u32 %s1308_s17, 4  ;;  %s1310_s5 = smov 8   ;;  %s86_s18 = int_to_ptr.vmem [resolvable:$true] %s85_s18 }
  0x11   :  { %91 = dma.hbm_to_vmem [thread:$0]  %s84_s16, 256, %s86_s18, [#allocation9], %s1309_s19, %s1309_s19, %s1310_s5  }
  0x12   :  { %1292 = dma.done.wait [#allocation3], 32  }
  0x13   :  { %1293 = vsyncadd [#allocation3], 4294967264 }
  0x14   :  { %1294 = dma.done.wait [#allocation6], 512  }
  0x15   :  { %1295 = vsyncadd [#allocation6], 4294966784 }
  0x16   :  { %1296 = dma.done.wait [#allocation9], 512  }
  0x17   :  { %1297 = vsyncadd [#allocation9], 4294966784  ;;  %v1060_v0 = vld [vmem:[%s1573_s2 + $0x8] sm:$0xff]  ;;  %v1059_v2 = vld [vmem:[%s1573_s2] sm:$0xff]  ;;  %vm138_vm0 = vcmask 261120   ;;  %vm232_vm1 = vcmask 64512  }
  0x18   :  { %v1062_v1 = vld [vmem:[%s1574_s3 + $0x8] sm:$0xff]  ;;  %v1061_v3 = vld [vmem:[%s1574_s3] sm:$0xff]  ;;  %148 = vmatpush.bf16.msra.mxu0 %v1060_v0  ;;  %v1418_v9 = vld [vmem:[#allocation10] sm:$0xff]  ;;  %s1312_s2 = smov 120   ;;  %s1313_s3 = smov 104   ;;  %vm294_vm2 = vcmask 1043456  }
  0x19   :  { %179 = vmatpush.bf16.msra.mxu1 %v1062_v1  ;;  %v1406_v4 = vld [vmem:[%s1571_s0] sm:$0xff]  ;;  %v1411_v5 = vld [vmem:[%s1571_s0 + $0x8] sm:$0xff]  ;;  %v125_v10 = vperm.slane %v1418_v9, 0  ;;  %v160_v11 = vperm.slane %v1418_v9, 1  ;;  %s1311_s0 = smov 112   ;;  %v191_v35 = vperm.slane %v1418_v9, 2 }
  0x1a   :  { %v1064_v6 = vld [vmem:[#allocation5 + $0x8] sm:$0xff]  ;;  %v1063_v7 = vld [vmem:[#allocation5] sm:$0xff]  ;;  %v117_v8 = vpack.c.bf16 %v1411_v5, %v1406_v4  ;;  %v1454_v58 = vld [vmem:[#allocation2] ss:$0 sm:$0xff]  ;;  %s1314_s30 = smov 24   ;;  %vm714_vm3 = vcmask 130048  }
  0x1b   :  { %210 = vmatpush.bf16.msra.mxu2 %v1064_v6  ;;  %v1458_v61 = vld [vmem:[#allocation2 + $0x1] ss:$0 sm:$0xff]  ;;  %vm717_vm4 = vcmask 195584   ;;  %vm884_vm11 = vcmask 523264   ;;  %s966_s21 = sshll.u32 %s1581_s10, 4  ;;  %s967_s21 = int_to_ptr.hbm [resolvable:$true] %s966_s21 }
  0x1c   :  { %149 = vmatpush.bf16.msra.mxu0 %v1059_v2 }
  0x1d   :  { %180 = vmatpush.bf16.msra.mxu1 %v1061_v3 }
  0x1f   :  { %211 = vmatpush.bf16.msra.mxu2 %v1063_v7  ;;  %989 = vmatmul.msk.bf16.vlgmr.msra.gmra.mxu0 %vm138_vm0, %v117_v8 }
  0x20   :  { %998 = vmatmul.msk.bf16.vlgmr.msra.gmra.mxu1 %vm138_vm0, %v117_v8 }
  0x22   :  { %1007 = vmatmul.msk.bf16.vlgmr.msra.gmra.mxu2 %vm138_vm0, %v117_v8 }
  0x9c   :  { %v151_v12 = vpop.f32.mrf.mxu0 }
  0x9d   :  { %v182_v13 = vpop.f32.mrf.mxu1  ;;  %v152_v14 = vadd.f32 %v151_v12, %v125_v10 }
  0x9e   :  { %v183_v15 = vadd.f32 %v182_v13, %v160_v11 }
  0x9f   :  { %v218_v16 = vpack.c.bf16 %v152_v14, %v152_v14 }
  0xa0   :  { %v220_v17 = vpack.c.bf16 %v183_v15, %v183_v15 }
  0xa1   :  { %v335_v18 = vunpack.c.l.b16 %v218_v16 }
  0xa2   :  { %v340_v19 = vunpack.c.l.b16 %v220_v17  ;;  %v237_v20 = vsel %vm232_vm1, %v220_v17, 0 }
  0xa3   :  { %246 = vmatpush.bf16.xpose.msra.mxu3 %v237_v20  ;;  %v336_v21 = vpack.c.b16 %v335_v18, %v335_v18 }
  0xa4   :  { %v341_v22 = vpack.c.b16 %v340_v19, %v340_v19  ;;  %v153_v23 = vpop.f32.mrf.mxu0 }
  0xa5   :  { %v184_v24 = vpop.f32.mrf.mxu1  ;;  %v154_v25 = vadd.f32 %v153_v23, %v125_v10  ;;  %337 = vrot.lane.b32.xlu1 %v336_v21, %s1312_s2  ;;  %v213_v29 = vpop.f32.mrf.mxu2 }
  0xa6   :  { %v185_v26 = vadd.f32 %v184_v24, %v160_v11  ;;  %466 = vrot.lane.b32.xlu2 %v341_v22, %s1311_s0  ;;  %342 = vrot.lane.b32.xlu0 %v341_v22, %s1312_s2  ;;  %v214_v38 = vadd.f32 %v213_v29, %v191_v35 }
  0xa7   :  { %v219_v27 = vpack.c.bf16 %v154_v25, %v154_v25 }
  0xa8   :  { %v221_v28 = vpack.c.bf16 %v185_v26, %v185_v26  ;;  %v222_v40 = vpack.c.bf16 %v214_v38, %v214_v38 }
  0xa9   :  { %v364_v30 = vunpack.c.l.b16 %v219_v27 }
  0xaa   :  { %v369_v31 = vunpack.c.l.b16 %v221_v28  ;;  %1008 = vmatmul.msk.bf16.vlgmr.msra.gmra.mxu3 %vm232_vm1, %v218_v16  ;;  %v256_v32 = vsel %vm232_vm1, %v221_v28, 0  ;;  %v413_v42 = vunpack.c.l.b16 %v222_v40  ;;  %v296_v59 = vsel %vm294_vm2, %v222_v40, 0 }
  0xab   :  { %265 = vmatpush.bf16.xpose.msrb.mxu0 %v256_v32  ;;  %v365_v33 = vpack.c.b16 %v364_v30, %v364_v30  ;;  %305 = vmatpush.bf16.msrb.mxu1 %v296_v59 }
  0xac   :  { %v370_v34 = vpack.c.b16 %v369_v31, %v369_v31  ;;  %v1441_v44 = vpack.c.b16 %v413_v42, %v413_v42 }
  0xad   :  { %366 = vrot.lane.b32.xlu1 %v365_v33, %s1312_s2  ;;  %v215_v36 = vpop.f32.mrf.mxu2 }
  0xae   :  { %489 = vrot.lane.b32.xlu2 %v370_v34, %s1311_s0  ;;  %371 = vrot.lane.b32.xlu0 %v370_v34, %s1312_s2  ;;  %v216_v37 = vadd.f32 %v215_v36, %v191_v35 }
  0xb0   :  { %v223_v39 = vpack.c.bf16 %v216_v37, %v216_v37 }
  0xb2   :  { %1009 = vmatmul.msk.bf16.vlgmr.msrb.gmra.mxu0 %vm232_vm1, %v219_v27  ;;  %v437_v41 = vunpack.c.l.b16 %v223_v39  ;;  %v315_v60 = vsel %vm294_vm2, %v223_v39, 0 }
  0xb3   :  { %324 = vmatpush.bf16.msrb.mxu2 %v315_v60 }
  0xb4   :  { %v1439_v43 = vpack.c.b16 %v437_v41, %v437_v41 }
  0xb5   :  { %487 = vrot.lane.b32.xlu1 %v365_v33, %s1311_s0 }
  0xb6   :  { %578 = vrot.lane.b32.xlu2 %v341_v22, %s1313_s3  ;;  %464 = vrot.lane.b32.xlu0 %v336_v21, %s1311_s0 }
  0xbd   :  { %576 = vrot.lane.b32.xlu1 %v336_v21, %s1313_s3 }
  0xbe   :  { %599 = vrot.lane.b32.xlu2 %v365_v33, %s1313_s3  ;;  %601 = vrot.lane.b32.xlu0 %v370_v34, %s1313_s3 }
  0xc6   :  { %439 = vrot.lane.b32.xlu0 %v1439_v43, %s1312_s2  ;;  %530 = vrot.lane.b32.xlu2 %v1441_v44, %s1311_s0 }
 0x100   :  { %v467_v45 = vpop.permute.xlu2 %466 }
 0x101   :  { %v472_v49 = vsel %vm232_vm1, %v467_v45, 0 }
 0x108   :  { %v490_v46 = vpop.permute.xlu2 %489 }
 0x109   :  { %v495_v55 = vsel %vm232_vm1, %v490_v46, 0 }
 0x110   :  { %v579_v50 = vpop.permute.xlu2 %578 }
 0x111   :  { %v584_v53 = vsel %vm232_vm1, %v579_v50, 0 }
 0x117   :  { %v338_v51 = vpop.permute.xlu1 %337 }
 0x118   :  { %v343_v47 = vpop.permute.xlu0 %342  ;;  %v600_v15 = vpop.permute.xlu2 %599 }
 0x119   :  { %v348_v48 = vsel %vm232_vm1, %v343_v47, 0 }
 0x11a   :  { %357 = vmatpush.bf16.xpose.msrb.mxu3 %v348_v48 }
 0x11f   :  { %v367_v56 = vpop.permute.xlu1 %366 }
 0x120   :  { %v372_v52 = vpop.permute.xlu0 %371  ;;  %v531_v38 = vpop.permute.xlu2 %530 }
 0x121   :  { %v377_v54 = vsel %vm232_vm1, %v372_v52, 0  ;;  %1012 = vmatmul.msk.bf16.vlgmr.msrb.gmra.mxu3 %vm232_vm1, %v338_v51  ;;  %v536_v42 = vsel %vm294_vm2, %v531_v38, 0 }
 0x122   :  { %481 = vmatpush.bf16.xpose.msra.mxu3 %v472_v49  ;;  %386 = vmatpush.bf16.xpose.msra.mxu0 %v377_v54 }
 0x127   :  { %v488_v10 = vpop.permute.xlu1 %487 }
 0x128   :  { %v465_v57 = vpop.permute.xlu0 %464 }
 0x129   :  { %1013 = vmatmul.msk.bf16.vlgmr.msra.gmra.mxu0 %vm232_vm1, %v367_v56 }
 0x12a   :  { %593 = vmatpush.bf16.xpose.msrb.mxu3 %v584_v53  ;;  %504 = vmatpush.bf16.xpose.msrb.mxu0 %v495_v55 }
 0x12d   :  { %v248_v62 = vpop.f32.mrf.mxu3 }
 0x12e   :  { %v249_v63 = vadd.f32 %v1454_v58, %v248_v62 }
 0x12f   :  { %v267_v0 = vpop.f32.mrf.mxu0  ;;  %v577_v14 = vpop.permute.xlu1 %576 }
 0x130   :  { %v268_v1 = vadd.f32 %v1458_v61, %v267_v0  ;;  %v602_v2 = vpop.permute.xlu0 %601  ;;  %v271_v3 = vsel %vm232_vm1, %v249_v63, -inf }
 0x131   :  { %v607_v6 = vsel %vm232_vm1, %v602_v2, 0  ;;  %1016 = vmatmul.msk.bf16.vlgmr.msra.gmra.mxu3 %vm232_vm1, %v465_v57  ;;  %272 = vmax.xlane.f32.xlu1 %v271_v3 }
 0x132   :  { %616 = vmatpush.bf16.xpose.msra.mxu0 %v607_v6  ;;  %v274_v7 = vsel %vm232_vm1, %v268_v1, -inf }
 0x133   :  { %275 = vmax.xlane.f32.xlu0 %v274_v7 }
 0x135   :  { %v250_v8 = vpop.f32.mrf.mxu3 }
 0x137   :  { %v269_v11 = vpop.f32.mrf.mxu0 }
 0x138   :  { %v440_v12 = vpop.permute.xlu0 %439 }
 0x139   :  { %1017 = vmatmul.msk.bf16.vlgmr.msrb.gmra.mxu0 %vm232_vm1, %v488_v10  ;;  %v445_v13 = vsel %vm294_vm2, %v440_v12, 0 }
 0x13a   :  { %454 = vmatpush.bf16.msra.mxu2 %v445_v13 }
 0x141   :  { %1020 = vmatmul.msk.bf16.vlgmr.msrb.gmra.mxu3 %vm232_vm1, %v577_v14 }
 0x147   :  { %551 = vrot.lane.b32.xlu0 %v1439_v43, %s1311_s0 }
 0x149   :  { %1021 = vmatmul.msk.bf16.vlgmr.msra.gmra.mxu0 %vm232_vm1, %v600_v15 }
 0x14a   :  { %415 = vrot.lane.b32.xlu1 %v1441_v44, %s1312_s2 }
 0x1a4   :  { %v359_v16 = vpop.f32.mrf.mxu3  ;;  %v273_v17 = vpop.xlane.xlu1 %272 }
 0x1a5   :  { %v360_v18 = vadd.f32 %v1454_v58, %v359_v16  ;;  %v277_v19 = vsub.f32 %v249_v63, %v273_v17 }
 0x1a6   :  { %v276_v20 = vpop.xlane.xlu0 %275  ;;  %v388_v21 = vpop.f32.mrf.mxu0 }
 0x1a7   :  { %v279_v22 = vmul.f32 1.442695, %v277_v19  ;;  %v278_v23 = vsub.f32 %v268_v1, %v276_v20  ;;  %v392_v24 = vsel %vm232_vm1, %v360_v18, -inf  ;;  %v389_v26 = vadd.f32 %v1458_v61, %v388_v21 }
 0x1a8   :  { %393 = vmax.xlane.f32.xlu2 %v392_v24 }
 0x1a9   :  { %1108 = vpow2.f32 %v279_v22  ;;  %v281_v25 = vmul.f32 1.442695, %v278_v23  ;;  %v395_v30 = vsel %vm232_vm1, %v389_v26, -inf }
 0x1ab   :  { %1110 = vpow2.f32 %v281_v25 }
 0x1ac   :  { %v361_v27 = vpop.f32.mrf.mxu3 }
 0x1ae   :  { %v390_v28 = vpop.f32.mrf.mxu0 }
 0x1af   :  { %v1477_v29 = vpop.eup %1108 }
 0x1b0   :  { %396 = vmax.xlane.f32.xlu2 %v395_v30  ;;  %v289_v31 = vpack.c.bf16 %v1477_v29, %v1477_v29 }
 0x1b1   :  { %v1482_v32 = vpop.eup %1110 }
 0x1b2   :  { %1010 = vmatmul.msk.bf16.vlgmr.msrb.gmra.mxu1 %vm232_vm1, %v289_v31  ;;  %v290_v33 = vpack.c.bf16 %v1482_v32, %v1482_v32 }
 0x1b4   :  { %1011 = vmatmul.msk.bf16.vlgmr.msrb.gmra.mxu2 %vm232_vm1, %v290_v33  ;;  %v483_v34 = vpop.f32.mrf.mxu3 }
 0x1b5   :  { %v484_v35 = vadd.f32 %v1454_v58, %v483_v34 }
 0x1b6   :  { %v506_v36 = vpop.f32.mrf.mxu0 }
 0x1b7   :  { %v510_v37 = vsel %vm232_vm1, %v484_v35, -inf  ;;  %v507_v39 = vadd.f32 %v1458_v61, %v506_v36 }
 0x1b8   :  { %511 = vmax.xlane.f32.xlu2 %v510_v37 }
 0x1b9   :  { %v513_v47 = vsel %vm232_vm1, %v507_v39, -inf  ;;  %v552_v48 = vpop.permute.xlu0 %551 }
 0x1ba   :  { %v557_v49 = vsel %vm294_vm2, %v552_v48, 0 }
 0x1bb   :  { %566 = vmatpush.bf16.msrb.mxu2 %v557_v49 }
 0x1bc   :  { %v485_v40 = vpop.f32.mrf.mxu3  ;;  %v416_v41 = vpop.permute.xlu1 %415 }
 0x1bd   :  { %v421_v45 = vsel %vm294_vm2, %v416_v41, 0  ;;  %v283_v41 = vsel %vm232_vm1, %v1477_v29, 0.0 }
 0x1be   :  { %v508_v46 = vpop.f32.mrf.mxu0  ;;  %430 = vmatpush.bf16.msra.mxu1 %v421_v45 }
 0x1c0   :  { %514 = vmax.xlane.f32.xlu2 %v513_v47 }
 0x1c2   :  { %545 = vmatpush.bf16.msrb.mxu1 %v536_v42  ;;  %v286_v42 = vsel %vm232_vm1, %v1482_v32, 0.0 }
 0x1c4   :  { %v595_v50 = vpop.f32.mrf.mxu3 }
 0x1c5   :  { %v596_v51 = vadd.f32 %v1454_v58, %v595_v50 }
 0x1c6   :  { %v618_v52 = vpop.f32.mrf.mxu0 }
 0x1c7   :  { %v619_v53 = vadd.f32 %v1458_v61, %v618_v52  ;;  %v622_v54 = vsel %vm232_vm1, %v596_v51, -inf }
 0x1c8   :  { %623 = vmax.xlane.f32.xlu0 %v622_v54 }
 0x1c9   :  { %v625_v55 = vsel %vm232_vm1, %v619_v53, -inf }
 0x1ca   :  { %626 = vmax.xlane.f32.xlu1 %v625_v55 }
 0x1cc   :  { %v597_v56 = vpop.f32.mrf.mxu3 }
 0x1ce   :  { %v620_v57 = vpop.f32.mrf.mxu0 }
 0x1d8   :  { %663 = vrot.lane.b32.xlu2 %v1439_v43, %s1313_s3 }
 0x1e0   :  { %642 = vrot.lane.b32.xlu2 %v1441_v44, %s1313_s3 }
 0x21b   :  { %v394_v59 = vpop.xlane.xlu2 %393 }
 0x21c   :  { %v398_v60 = vsub.f32 %v360_v18, %v394_v59 }
 0x21e   :  { %v400_v58 = vmul.f32 1.442695, %v398_v60 }
 0x220   :  { %1112 = vpow2.f32 %v400_v58 }
 0x223   :  { %v397_v62 = vpop.xlane.xlu2 %396 }
 0x224   :  { %v399_v61 = vsub.f32 %v389_v26, %v397_v62 }
 0x226   :  { %v1113_v63 = vpop.eup %1112  ;;  %v402_v0 = vmul.f32 1.442695, %v399_v61 }
 0x227   :  { %v410_v1 = vpack.c.bf16 %v1113_v63, %v1113_v63  ;;  %v404_v2 = vsel %vm232_vm1, %v1113_v63, 0.0 }
 0x228   :  { %1114 = vpow2.f32 %v402_v0  ;;  %405 = vadd.xlane.f32.xlu2 %v404_v2 }
 0x229   :  { %1014 = vmatmul.msk.bf16.vlgmr.msra.gmra.mxu1 %vm232_vm1, %v410_v1 }
 0x22b   :  { %v512_v3 = vpop.xlane.xlu2 %511 }
 0x22c   :  { %v516_v43 = vsub.f32 %v484_v35, %v512_v3 }
 0x22e   :  { %v1115_v6 = vpop.eup %1114  ;;  %v518_v7 = vmul.f32 1.442695, %v516_v43 }
 0x22f   :  { %v411_v44 = vpack.c.bf16 %v1115_v6, %v1115_v6  ;;  %v1505_v8 = vpop.f32.mrf.mxu1  ;;  %v407_v10 = vsel %vm232_vm1, %v1115_v6, 0.0 }
 0x230   :  { %1116 = vpow2.f32 %v518_v7  ;;  %408 = vadd.xlane.f32.xlu1 %v407_v10 }
 0x231   :  { %1015 = vmatmul.msk.bf16.vlgmr.msra.gmra.mxu2 %vm232_vm1, %v411_v44 }
 0x233   :  { %v515_v11 = vpop.xlane.xlu2 %514 }
 0x234   :  { %v517_v12 = vsub.f32 %v507_v39, %v515_v11 }
 0x236   :  { %v1117_v13 = vpop.eup %1116  ;;  %v520_v14 = vmul.f32 1.442695, %v517_v12 }
 0x237   :  { %v528_v15 = vpack.c.bf16 %v1117_v13, %v1117_v13  ;;  %v309_v16 = vpop.f32.mrf.mxu1  ;;  %v1509_v17 = vpop.f32.mrf.mxu2  ;;  %v522_v18 = vsel %vm232_vm1, %v1117_v13, 0.0 }
 0x238   :  { %1118 = vpow2.f32 %v520_v14  ;;  %523 = vadd.xlane.f32.xlu0 %v522_v18  ;;  %v1066_v14 = vld [vmem:[#allocation7 + $0x8] sm:$0xff] }
 0x239   :  { %1018 = vmatmul.msk.bf16.vlgmr.msrb.gmra.mxu1 %vm232_vm1, %v528_v15  ;;  %747 = vmatpush.bf16.msra.mxu3 %v1066_v14  ;;  %v1065_v15 = vld [vmem:[#allocation7] sm:$0xff] }
 0x23b   :  { %v624_v19 = vpop.xlane.xlu0 %623  ;;  %v664_v20 = vpop.permute.xlu2 %663 }
 0x23c   :  { %v628_v21 = vsub.f32 %v596_v51, %v624_v19  ;;  %v669_v22 = vsel %vm294_vm2, %v664_v20, 0 }
 0x23d   :  { %678 = vmatpush.bf16.msra.mxu2 %v669_v22  ;;  %v627_v23 = vpop.xlane.xlu1 %626  ;;  %748 = vmatpush.bf16.msra.mxu3 %v1065_v15 }
 0x23e   :  { %v1119_v24 = vpop.eup %1118  ;;  %v630_v25 = vmul.f32 1.442695, %v628_v21  ;;  %v629_v26 = vsub.f32 %v619_v53, %v627_v23 }
 0x23f   :  { %v529_v27 = vpack.c.bf16 %v1119_v24, %v1119_v24  ;;  %v328_v28 = vpop.f32.mrf.mxu2  ;;  %v525_v30 = vsel %vm232_vm1, %v1119_v24, 0.0 }
 0x240   :  { %1120 = vpow2.f32 %v630_v25  ;;  %v632_v31 = vmul.f32 1.442695, %v629_v26  ;;  %526 = vadd.xlane.f32.xlu1 %v525_v30 }
 0x241   :  { %1019 = vmatmul.msk.bf16.vlgmr.msrb.gmra.mxu2 %vm232_vm1, %v529_v27 }
 0x242   :  { %1122 = vpow2.f32 %v632_v31 }
 0x243   :  { %v643_v33 = vpop.permute.xlu2 %642 }
 0x244   :  { %v648_v34 = vsel %vm294_vm2, %v643_v33, 0 }
 0x245   :  { %657 = vmatpush.bf16.msra.mxu1 %v648_v34 }
 0x246   :  { %v1121_v35 = vpop.eup %1120 }
 0x247   :  { %v640_v36 = vpack.c.bf16 %v1121_v35, %v1121_v35  ;;  %v634_v37 = vsel %vm232_vm1, %v1121_v35, 0.0 }
 0x248   :  { %v1123_v38 = vpop.eup %1122  ;;  %635 = vadd.xlane.f32.xlu0 %v634_v37 }
 0x249   :  { %1022 = vmatmul.msk.bf16.vlgmr.msra.gmra.mxu1 %vm232_vm1, %v640_v36  ;;  %v637_v39 = vsel %vm232_vm1, %v1123_v38, 0.0  ;;  %v641_v40 = vpack.c.bf16 %v1123_v38, %v1123_v38 }
 0x24a   :  { %638 = vadd.xlane.f32.xlu1 %v637_v39 }
 0x250   :  { %284 = vadd.xlane.f32.xlu0 %v283_v41 }
 0x251   :  { %1023 = vmatmul.msk.bf16.vlgmr.msra.gmra.mxu2 %vm232_vm1, %v641_v40 }
 0x252   :  { %287 = vadd.xlane.f32.xlu1 %v286_v42 }
 0x29b   :  { %v406_v46 = vpop.xlane.xlu2 %405 }
 0x29c   :  { %1124 = vrcp.f32 %v406_v46 }
 0x2a2   :  { %v1125_v49 = vpop.eup %1124 }
 0x2a3   :  { %v409_v47 = vpop.xlane.xlu1 %408 }
 0x2a4   :  { %1126 = vrcp.f32 %v409_v47 }
 0x2a6   :  { %v432_v45 = vpop.f32.mrf.mxu1 }
 0x2a7   :  { %v462_v52 = vmul.f32 %v1125_v49, %v432_v45 }
 0x2aa   :  { %v1127_v50 = vpop.eup %1126 }
 0x2ab   :  { %v524_v55 = vpop.xlane.xlu0 %523 }
 0x2ac   :  { %1128 = vrcp.f32 %v524_v55 }
 0x2ae   :  { %v434_v48 = vpop.f32.mrf.mxu1 }
 0x2b2   :  { %v1129_v59 = vpop.eup %1128 }
 0x2b3   :  { %v527_v56 = vpop.xlane.xlu1 %526 }
 0x2b4   :  { %v456_v51 = vpop.f32.mrf.mxu2  ;;  %1130 = vrcp.f32 %v527_v56 }
 0x2b5   :  { %v463_v53 = vmul.f32 %v1127_v50, %v456_v51 }
 0x2b6   :  { %v547_v54 = vpop.f32.mrf.mxu1 }
 0x2b7   :  { %v1089_v29 = vpack.i.bf16 %v463_v53, %v462_v52  ;;  %v574_v62 = vmul.f32 %v1129_v59, %v547_v54  ;;  %v1067_v59 = vld [vmem:[#allocation8] sm:$0xff] }
 0x2b9   :  { %1090 = vrot.lane.b32.xlu0 %v1089_v29, %s1310_s5 }
 0x2ba   :  { %v1131_v60 = vpop.eup %1130 }
 0x2bb   :  { %v636_v1 = vpop.xlane.xlu0 %635 }
 0x2bc   :  { %v458_v57 = vpop.f32.mrf.mxu2  ;;  %1132 = vrcp.f32 %v636_v1 }
 0x2bd   :  { %v639_v2 = vpop.xlane.xlu1 %638  ;;  %v1068_v57 = vld [vmem:[#allocation8 + $0x8] sm:$0xff] }
 0x2be   :  { %v549_v32 = vpop.f32.mrf.mxu1  ;;  %1134 = vrcp.f32 %v639_v2  ;;  %840 = vmatpush.bf16.msrb.mxu0 %v1068_v57 }
 0x2c2   :  { %v1133_v6 = vpop.eup %1132  ;;  %841 = vmatpush.bf16.msrb.mxu0 %v1067_v59 }
 0x2c3   :  { %v285_v16 = vpop.xlane.xlu0 %284 }
 0x2c4   :  { %v568_v58 = vpop.f32.mrf.mxu2  ;;  %v1135_v7 = vpop.eup %1134  ;;  %1136 = vrcp.f32 %v285_v16 }
 0x2c5   :  { %v575_v61 = vmul.f32 %v1131_v60, %v568_v58  ;;  %v288_v18 = vpop.xlane.xlu1 %287 }
 0x2c6   :  { %v659_v63 = vpop.f32.mrf.mxu1  ;;  %1138 = vrcp.f32 %v288_v18  ;;  %v805_v18 = vperm.slane %v1418_v9, 4 }
 0x2c7   :  { %v1094_v0 = vpack.i.bf16 %v575_v61, %v574_v62  ;;  %v686_v10 = vmul.f32 %v1133_v6, %v659_v63 }
 0x2c9   :  { %1095 = vrot.lane.b32.xlu1 %v1094_v0, %s1305_s11 }
 0x2ca   :  { %v1137_v20 = vpop.eup %1136 }
 0x2cb   :  { %v332_v25 = vmul.f32 %v1137_v20, %v1505_v8  ;;  %v725_v8 = vperm.slane %v1418_v9, 3 }
 0x2cc   :  { %v570_v3 = vpop.f32.mrf.mxu2  ;;  %v1139_v21 = vpop.eup %1138 }
 0x2cd   :  { %v333_v26 = vmul.f32 %v1139_v21, %v1509_v17 }
 0x2ce   :  { %v661_v43 = vpop.f32.mrf.mxu1 }
 0x2d4   :  { %v680_v44 = vpop.f32.mrf.mxu2 }
 0x2d5   :  { %v687_v11 = vmul.f32 %v1135_v7, %v680_v44 }
 0x2d7   :  { %v1099_v12 = vpack.i.bf16 %v687_v11, %v686_v10 }
 0x2d9   :  { %1100 = vrot.lane.b32.xlu2 %v1099_v12, %s1314_s30 }
 0x2dc   :  { %v682_v13 = vpop.f32.mrf.mxu2 }
 0x32b   :  { %v1091_v19 = vpop.permute.xlu0 %1090 }
 0x32c   :  { %v1093_v22 = vunpack.i.h.bf16 %v1091_v19  ;;  %v1092_v23 = vunpack.i.l.bf16 %v1091_v19 }
 0x32e   :  { %v712_v31 = vsel %vm232_vm1, %v332_v25, %v1092_v23  ;;  %v713_v33 = vsel %vm232_vm1, %v333_v26, %v1093_v22  ;;  %v808_v25 = vperm.slane %v1418_v9, 5 }
 0x333   :  { %v1101_v24 = vpop.permute.xlu2 %1100 }
 0x334   :  { %v1103_v34 = vunpack.i.h.bf16 %v1101_v24  ;;  %v1102_v35 = vunpack.i.l.bf16 %v1101_v24 }
 0x33b   :  { %v1096_v27 = vpop.permute.xlu1 %1095 }
 0x33c   :  { %v1098_v28 = vunpack.i.h.bf16 %v1096_v27  ;;  %v1097_v30 = vunpack.i.l.bf16 %v1096_v27 }
 0x33e   :  { %v716_v36 = vsel %vm714_vm3, %v713_v33, %v1098_v28  ;;  %v715_v37 = vsel %vm714_vm3, %v712_v31, %v1097_v30  ;;  %v1072_v31 = vld [vmem:[%s1578_s7 + $0x18] sm:$0xff]  ;;  %v1071_v33 = vld [vmem:[%s1578_s7 + $0x10] sm:$0xff] }
 0x33f   :  { %v719_v38 = vsel %vm717_vm4, %v716_v36, %v1103_v34  ;;  %v718_v39 = vsel %vm717_vm4, %v715_v37, %v1102_v35  ;;  %892 = vmatpush.bf16.msrb.mxu1 %v1072_v31  ;;  %v1070_v34 = vld [vmem:[%s1578_s7 + $0x8] sm:$0xff]  ;;  %v1069_v35 = vld [vmem:[%s1578_s7] sm:$0xff]  ;;  %s1315_s7 = smov [#allocation11]  }
 0x340   :  { %v720_v40 = vpack.c.bf16 %v719_v38, %v718_v39  ;;  %v1106_v37 = vld [vmem:[%s1580_s9] ss:$0 sm:$0xff]  ;;  %s964_s9 = sshll.u32 %s1315_s7, 4  ;;  %s965_s9 = int_to_ptr.vmem [resolvable:$true] %s964_s9 }
 0x342   :  { %1032 = vmatmul.msk.bf16.vlgmr.msra.gmra.mxu3 %vm138_vm0, %v720_v40 }
 0x343   :  { %893 = vmatpush.bf16.msrb.mxu1 %v1071_v33 }
 0x347   :  { %894 = vmatpush.bf16.msrb.mxu1 %v1070_v34 }
 0x34b   :  { %895 = vmatpush.bf16.msrb.mxu1 %v1069_v35 }
 0x3c5   :  { %v750_v17 = vpop.f32.mrf.mxu3 }
 0x3c6   :  { %v751_v41 = vadd.f32 %v750_v17, %v725_v8 }
 0x3c8   :  { %v755_v42 = vadd.f32 %v751_v41, %v1406_v4 }
 0x3ca   :  { %v757_v45 = vsel %vm138_vm0, %v755_v42, 0.0  ;;  %v765_v46 = vmul.f32 %v755_v42, %v755_v42 }
 0x3cb   :  { %758 = vadd.xlane.f32.xlu0 %v757_v45 }
 0x3cc   :  { %v767_v47 = vsel %vm138_vm0, %v765_v46, 0.0 }
 0x3cd   :  { %v752_v48 = vpop.f32.mrf.mxu3  ;;  %768 = vadd.xlane.f32.xlu2 %v767_v47 }
 0x3ce   :  { %v753_v49 = vadd.f32 %v752_v48, %v725_v8 }
 0x3d0   :  { %v756_v50 = vadd.f32 %v753_v49, %v1411_v5 }
 0x3d2   :  { %v760_v51 = vsel %vm138_vm0, %v756_v50, 0.0  ;;  %v766_v52 = vmul.f32 %v756_v50, %v756_v50 }
 0x3d3   :  { %761 = vadd.xlane.f32.xlu1 %v760_v51 }
 0x3d4   :  { %v770_v53 = vsel %vm138_vm0, %v766_v52, 0.0 }
 0x3d5   :  { %771 = vadd.xlane.f32.xlu0 %v770_v53 }
 0x43e   :  { %v759_v54 = vpop.xlane.xlu0 %758 }
 0x43f   :  { %v763_v4 = vmul.f32 0.03125, %v759_v54 }
 0x440   :  { %v769_v29 = vpop.xlane.xlu2 %768 }
 0x441   :  { %v775_v55 = vmul.f32 %v763_v4, %v763_v4  ;;  %v773_v56 = vmul.f32 0.03125, %v769_v29  ;;  %v779_v15 = vsub.f32 %v755_v42, %v763_v4  ;;  %v859_v42 = vperm.slane %v1418_v9, 6 }
 0x443   :  { %v777_v32 = vsub.f32 %v773_v56, %v775_v55 }
 0x445   :  { %v781_v60 = vadd.f32 1e-05, %v777_v32 }
 0x446   :  { %v762_v58 = vpop.xlane.xlu1 %761 }
 0x447   :  { %1140 = vrsqrt.f32 %v781_v60  ;;  %v764_v5 = vmul.f32 0.03125, %v762_v58  ;;  %vm789_vm6 = vweird.f32 %v781_v60 }
 0x448   :  { %v772_v62 = vpop.xlane.xlu0 %771 }
 0x449   :  { %v776_v61 = vmul.f32 %v764_v5, %v764_v5  ;;  %v774_v63 = vmul.f32 0.03125, %v772_v62  ;;  %v780_v21 = vsub.f32 %v756_v50, %v764_v5 }
 0x44b   :  { %v778_v0 = vsub.f32 %v774_v63, %v776_v61 }
 0x44d   :  { %v1141_v1 = vpop.eup %1140  ;;  %v782_v2 = vadd.f32 1e-05, %v778_v0 }
 0x44e   :  { %v784_v3 = vmul.f32 %v1141_v1, %v781_v60  ;;  %vm790_vm5 = vweird.f32 %v1141_v1 }
 0x44f   :  { %1142 = vrsqrt.f32 %v782_v2  ;;  %vm791_vm7 = vmor %vm789_vm6, %vm790_vm5  ;;  %vm799_vm9 = vweird.f32 %v782_v2 }
 0x450   :  { %v785_v43 = vmul.f32 %v1141_v1, %v784_v3 }
 0x452   :  { %v786_v6 = vmul.f32 0.5, %v785_v43 }
 0x454   :  { %v787_v7 = vsub.f32 1.5, %v786_v6 }
 0x455   :  { %v1143_v44 = vpop.eup %1142 }
 0x456   :  { %v788_v10 = vmul.f32 %v1141_v1, %v787_v7  ;;  %v794_v11 = vmul.f32 %v1143_v44, %v782_v2  ;;  %vm800_vm8 = vweird.f32 %v1143_v44 }
 0x457   :  { %vm801_vm10 = vmor %vm799_vm9, %vm800_vm8 }
 0x458   :  { %v795_v12 = vmul.f32 %v1143_v44, %v794_v11  ;;  %v792_v13 = vsel %vm791_vm7, %v1141_v1, %v788_v10 }
 0x459   :  { %v803_v19 = vmul.f32 %v792_v13, %v779_v15 }
 0x45a   :  { %v796_v14 = vmul.f32 0.5, %v795_v12 }
 0x45b   :  { %v806_v23 = vmul.f32 %v805_v18, %v803_v19  ;;  %v1107_v19 = vld [vmem:[#allocation10 + $0x8] ss:$0 sm:$0xff] }
 0x45c   :  { %v797_v16 = vsub.f32 1.5, %v796_v14  ;;  %v952_v14 = vperm.slane %v1418_v9, 7 }
 0x45d   :  { %v809_v27 = vadd.f32 %v808_v25, %v806_v23 }
 0x45e   :  { %v798_v20 = vmul.f32 %v1143_v44, %v797_v16 }
 0x460   :  { %v802_v22 = vsel %vm801_vm10, %v1143_v44, %v798_v20 }
 0x461   :  { %v804_v24 = vmul.f32 %v802_v22, %v780_v21 }
 0x463   :  { %v807_v26 = vmul.f32 %v805_v18, %v804_v24 }
 0x465   :  { %v810_v28 = vadd.f32 %v808_v25, %v807_v26 }
 0x467   :  { %v811_v30 = vpack.c.bf16 %v810_v28, %v809_v27 }
 0x469   :  { %1041 = vmatmul.msk.bf16.vlgmr.msrb.gmra.mxu0 %vm138_vm0, %v811_v30 }
 0x4e6   :  { %v843_v36 = vpop.f32.mrf.mxu0 }
 0x4e7   :  { %v844_v38 = vadd.f32 %v1106_v37, %v843_v36 }
 0x4e9   :  { %v848_v8 = vmax.f32 %v844_v38, 0.0 }
 0x4ee   :  { %v845_v39 = vpop.f32.mrf.mxu0 }
 0x4ef   :  { %v846_v40 = vadd.f32 %v1106_v37, %v845_v39 }
 0x4f1   :  { %v849_v17 = vmax.f32 %v846_v40, 0.0 }
 0x4f3   :  { %v850_v41 = vpack.c.bf16 %v849_v17, %v848_v8 }
 0x4f5   :  { %1058 = vmatmul.msk.bf16.vlgmr.msrb.gmra.mxu1 %vm884_vm11, %v850_v41 }
 0x572   :  { %v897_v45 = vpop.f32.mrf.mxu1 }
 0x573   :  { %v898_v46 = vadd.f32 %v897_v45, %v859_v42 }
 0x575   :  { %v902_v47 = vadd.f32 %v898_v46, %v809_v27 }
 0x577   :  { %v904_v48 = vsel %vm138_vm0, %v902_v47, 0.0  ;;  %v912_v49 = vmul.f32 %v902_v47, %v902_v47 }
 0x578   :  { %905 = vadd.xlane.f32.xlu0 %v904_v48 }
 0x579   :  { %v914_v50 = vsel %vm138_vm0, %v912_v49, 0.0 }
 0x57a   :  { %v899_v51 = vpop.f32.mrf.mxu1  ;;  %915 = vadd.xlane.f32.xlu2 %v914_v50 }
 0x57b   :  { %v900_v52 = vadd.f32 %v899_v51, %v859_v42 }
 0x57d   :  { %v903_v53 = vadd.f32 %v900_v52, %v810_v28 }
 0x57f   :  { %v907_v54 = vsel %vm138_vm0, %v903_v53, 0.0  ;;  %v913_v4 = vmul.f32 %v903_v53, %v903_v53 }
 0x580   :  { %908 = vadd.xlane.f32.xlu1 %v907_v54 }
 0x581   :  { %v917_v29 = vsel %vm138_vm0, %v913_v4, 0.0 }
 0x582   :  { %918 = vadd.xlane.f32.xlu0 %v917_v29 }
 0x5eb   :  { %v906_v55 = vpop.xlane.xlu0 %905 }
 0x5ec   :  { %v910_v56 = vmul.f32 0.03125, %v906_v55 }
 0x5ed   :  { %v916_v57 = vpop.xlane.xlu2 %915 }
 0x5ee   :  { %v922_v32 = vmul.f32 %v910_v56, %v910_v56  ;;  %v920_v59 = vmul.f32 0.03125, %v916_v57  ;;  %v926_v13 = vsub.f32 %v902_v47, %v910_v56 }
 0x5f0   :  { %v924_v60 = vsub.f32 %v920_v59, %v922_v32 }
 0x5f2   :  { %v928_v58 = vadd.f32 1e-05, %v924_v60 }
 0x5f3   :  { %v909_v5 = vpop.xlane.xlu1 %908 }
 0x5f4   :  { %1144 = vrsqrt.f32 %v928_v58  ;;  %v911_v62 = vmul.f32 0.03125, %v909_v5  ;;  %vm936_vm13 = vweird.f32 %v928_v58 }
 0x5f5   :  { %v919_v61 = vpop.xlane.xlu0 %918 }
 0x5f6   :  { %v923_v63 = vmul.f32 %v911_v62, %v911_v62  ;;  %v921_v0 = vmul.f32 0.03125, %v919_v61  ;;  %v927_v25 = vsub.f32 %v903_v53, %v911_v62 }
 0x5f8   :  { %v925_v1 = vsub.f32 %v921_v0, %v923_v63 }
 0x5fa   :  { %v1145_v2 = vpop.eup %1144  ;;  %v929_v3 = vadd.f32 1e-05, %v925_v1 }
 0x5fb   :  { %v931_v43 = vmul.f32 %v1145_v2, %v928_v58  ;;  %vm937_vm12 = vweird.f32 %v1145_v2 }
 0x5fc   :  { %1146 = vrsqrt.f32 %v929_v3  ;;  %vm938_vm14 = vmor %vm936_vm13, %vm937_vm12  ;;  %vm946_vm1 = vweird.f32 %v929_v3 }
 0x5fd   :  { %v932_v6 = vmul.f32 %v1145_v2, %v931_v43 }
 0x5ff   :  { %v933_v7 = vmul.f32 0.5, %v932_v6 }
 0x601   :  { %v934_v44 = vsub.f32 1.5, %v933_v7 }
 0x602   :  { %v1147_v10 = vpop.eup %1146 }
 0x603   :  { %v935_v11 = vmul.f32 %v1145_v2, %v934_v44  ;;  %v941_v12 = vmul.f32 %v1147_v10, %v929_v3  ;;  %vm947_vm15 = vweird.f32 %v1147_v10 }
 0x604   :  { %vm948_vm2 = vmor %vm946_vm1, %vm947_vm15 }
 0x605   :  { %v939_v15 = vsel %vm938_vm14, %v1145_v2, %v935_v11  ;;  %v942_v16 = vmul.f32 %v1147_v10, %v941_v12 }
 0x606   :  { %v950_v18 = vmul.f32 %v939_v15, %v926_v13 }
 0x607   :  { %v943_v20 = vmul.f32 0.5, %v942_v16 }
 0x608   :  { %v953_v21 = vmul.f32 %v952_v14, %v950_v18 }
 0x609   :  { %v944_v22 = vsub.f32 1.5, %v943_v20 }
 0x60a   :  { %v956_v23 = vadd.f32 %v1107_v19, %v953_v21 }
 0x60b   :  { %v945_v24 = vmul.f32 %v1147_v10, %v944_v22 }
 0x60c   :  { %958 = vst.msk [vmem:[#allocation11] sm:$0xff] %vm138_vm0, %v956_v23 }
 0x60d   :  { %v949_v26 = vsel %vm948_vm2, %v1147_v10, %v945_v24 }
 0x60e   :  { %v951_v27 = vmul.f32 %v949_v26, %v927_v25 }
 0x610   :  { %v954_v9 = vmul.f32 %v952_v14, %v951_v27 }
 0x612   :  { %v957_v28 = vadd.f32 %v1107_v19, %v954_v9 }
 0x614   :  { %959 = vst.msk [vmem:[#allocation11 + $0x8] sm:$0xff] %vm138_vm0, %v957_v28 }
 0x615   :  { %972 = dma.vmem_to_hbm [thread:$0]  %s965_s9, 256, %s967_s21, [#allocation4], %s1309_s19, %s1309_s19, %s1310_s5  }
 0x616   :  { %1298 = dma.done.wait [#allocation4], 256  }
 0x617   :  { %1299 = vsyncadd [#allocation4], 4294967040 }
 0x618   :  { %977 = vsyncpa [#allocation3], 1 }
 0x619   :  { %978 = vsyncpa [#allocation6], 1 }
 0x61a   :  { %979 = vsyncpa [#allocation9], 1 }
 0x61b   :  { %980 = vsyncpa [#allocation4], 1 }

</bundles_post_ra>
